<compile_context>
chip_gen: v5e
topology: v5e:2x2
jax: 0.10.0
libtpu: 0.0.40
codegen_flags: <defaults>
</compile_context>

<pallas_src>
import functools

import jax
import jax.numpy as jnp
from jax.experimental import pallas as pl
from jax.experimental.pallas import tpu as pltpu


def _label_smooth_kernel(x_ref, tgt_ref, out_ref, *,
                         smoothing, n_total, c_total, block_rows, mask_rows):
    """One row tile: out_ref[0, 0] = sum over valid rows of the per-row loss."""
    x = x_ref[...]                                   # (TN, C), native dtype
    tn, c = x.shape

    # f32 working copy: HBM traffic stays in the native dtype; the upcast is
    # purely in-VMEM (accounted for in the wrapper's tile sizing).
    # TODO(synk): for bf16 logits on v6e/v7x, keep max/subtract/weighted-select
    # in bf16 (f32 only for the exp-sum accumulation) to halve temp VMEM and
    # double EUP throughput; kept f32 here for v5e (no bf16 VPU/EUP) and to
    # match reference accuracy.
    xf = x.astype(jnp.float32)

    # Numerically stable row-wise logsumexp.
    m = jnp.max(xf, axis=-1, keepdims=True)                           # (TN, 1)
    lse = m + jnp.log(jnp.sum(jnp.exp(xf - m), axis=-1, keepdims=True))

    # Smoothing weights sum to 1, so
    #   per_row = -sum_c w_c * (x_c - lse) = lse - sum_c w_c * x_c
    # -> a single select + multiply + reduce pass over the class axis
    # (no separate sum_x / x_at_tgt reductions, no large cancelling terms).
    off_w = smoothing / (c_total - 1.0) if c_total > 1 else 0.0
    on_w = 1.0 - smoothing
    class_ids = jax.lax.broadcasted_iota(jnp.int32, (tn, c), 1)
    tgt = tgt_ref[...]                                                # (TN, 1) int32
    w = jnp.where(class_ids == tgt, jnp.float32(on_w), jnp.float32(off_w))
    wx = jnp.sum(w * xf, axis=-1, keepdims=True)                      # (TN, 1)

    per_row = lse - wx                                                # (TN, 1)

    if mask_rows:
        # Partial last tile: padded rows hold garbage (possibly NaN/Inf after
        # the exp).  jnp.where (NOT a multiplicative 0/1 mask) is required so
        # those rows can never poison the sum.
        i = pl.program_id(0)
        row_ids = i * block_rows + jax.lax.broadcasted_iota(jnp.int32, (tn, 1), 0)
        per_row = jnp.where(row_ids < n_total, per_row, 0.0)

    out_ref[0, 0] = jnp.sum(per_row)


def label_smooth_loss(x, target, smoothing=0.0, block_rows=None):
    """x: (..., C) float (any float dtype); target: (...,) int. Returns f32 scalar."""
    c = x.shape[-1]
    x2 = x.reshape(-1, c)                       # native dtype; no wrapper upcast
    t2 = target.reshape(-1, 1).astype(jnp.int32)
    n = x2.shape[0]
    itemsize = jnp.dtype(x2.dtype).itemsize

    # Generation-aware VMEM budgeting (v5e/v6e: 128 MiB physical, v7x: 64 MiB).
    try:
        vmem_cap = int(pltpu.get_tpu_info().vmem_capacity_bytes)
    except Exception:
        vmem_cap = 64 * 1024 * 1024             # conservative fallback
    # 3/4 of physical, capped: ~48 MiB on v7x, ~96 MiB on v5e/v6e.
    vmem_limit = min((vmem_cap * 3) // 4, 100 * 1024 * 1024)

    # Row-tile sizing: maximize the DMA tile (per-grid-step overhead ~0.35 us,
    # this kernel is HBM-bandwidth bound) while keeping
    #   2x double-buffered logits + 2x lane-padded targets + ~4x (TN,C) f32/i32
    # temporaries within ~3/4 of the scoped VMEM limit.
    c_pad = ((c + 127) // 128) * 128            # lane padding of the class axis
    bytes_per_row = (2 * c_pad * itemsize       # logits, double-buffered, native dtype
                     + 2 * 128 * 4              # targets (bn,1) -> (bn,128) lane pad
                     + 4 * c_pad * 4)           # in-kernel f32/i32 temporaries
    tile_budget = min((vmem_limit * 3) // 4, 36 * 1024 * 1024)
    if block_rows is None:
        bn = min(n, max(8, tile_budget // bytes_per_row))
    else:
        bn = min(n, int(block_rows))
    if bn != n:
        bn = max(8, (bn // 8) * 8)              # sublane (8) alignment
    grid_n = pl.cdiv(n, bn)
    mask_rows = (n % bn) != 0                   # statically skip mask when exact

    kernel = functools.partial(
        _label_smooth_kernel, smoothing=float(smoothing), n_total=n,
        c_total=c, block_rows=bn, mask_rows=mask_rows)

    cost = pl.CostEstimate(
        flops=6 * n * c,
        transcendentals=n * c,
        bytes_accessed=n * c * itemsize + n * 4 + grid_n * 4)

    # TODO(synk): if xprof still shows exposed input DMA with these tiles, add
    # pipeline_mode=pl.Buffered(3) on the logits BlockSpec (cheap on v5e/v6e;
    # mind VMEM headroom on v7x).
    partials = pl.pallas_call(
        kernel,
        out_shape=jax.ShapeDtypeStruct((grid_n, 1), jnp.float32),
        grid_spec=pltpu.PrefetchScalarGridSpec(
            num_scalar_prefetch=0,
            grid=(grid_n,),
            in_specs=[
                pl.BlockSpec((bn, c), lambda i: (i, 0)),   # logits tile
                pl.BlockSpec((bn, 1), lambda i: (i, 0)),   # targets tile
            ],
            # One f32 partial per grid step -> disjoint output blocks, so the
            # row grid is safely "parallel" (megacore sharding on v7x); the
            # final reduction is a tree-sum in the wrapper (better accuracy
            # for huge N than one serial scalar accumulator).
            out_specs=pl.BlockSpec((1, 1), lambda i: (i, 0),
                                   memory_space=pltpu.SMEM),
        ),
        compiler_params=pltpu.CompilerParams(
            dimension_semantics=("parallel",),
            vmem_limit_bytes=vmem_limit),
        cost_estimate=cost,
    )(x2, t2)
    return jnp.sum(partials) / jnp.float32(n)


def _reference(x, target, smoothing):
    x = x.astype(jnp.float32)
    c = x.shape[-1]
    log_prob = jax.nn.log_softmax(x, axis=-1)
    weight = jnp.full_like(x, smoothing / (c - 1.0))
    one_hot = jax.nn.one_hot(target, c, dtype=x.dtype)
    weight = weight * (1.0 - one_hot) + one_hot * (1.0 - smoothing)
    return jnp.mean(jnp.sum(-weight * log_prob, axis=-1))


if __name__ == "__main__":
    key = jax.random.PRNGKey(0)
    kx, kt, kx2, kt2 = jax.random.split(key, 4)

    smoothing = 0.1

    # Test 1: small f32, single tile.
    N, C = 8, 32
    x = jax.random.normal(kx, (N, C), dtype=jnp.float32)
    target = jax.random.randint(kt, (N,), 0, C, dtype=jnp.int32)
    loss = jax.block_until_ready(label_smooth_loss(x, target, smoothing=smoothing))
    ref = _reference(x, target, smoothing)
    assert jnp.allclose(loss, ref, atol=1e-5, rtol=1e-5), (loss, ref)

    # Test 2: multi-tile grid with a partial (masked) last tile.
    N2, C2 = 20, 32
    x2 = jax.random.normal(kx2, (N2, C2), dtype=jnp.float32)
    target2 = jax.random.randint(kt2, (N2,), 0, C2, dtype=jnp.int32)
    loss2 = jax.block_until_ready(
        label_smooth_loss(x2, target2, smoothing=smoothing, block_rows=8))
    ref2 = _reference(x2, target2, smoothing)
    assert jnp.allclose(loss2, ref2, atol=1e-5, rtol=1e-5), (loss2, ref2)

    # Test 3: native bf16 input (no wrapper upcast; kernel casts internally).
    x3 = x.astype(jnp.bfloat16)
    loss3 = jax.block_until_ready(label_smooth_loss(x3, target, smoothing=smoothing))
    ref3 = _reference(x3, target, smoothing)
    assert jnp.allclose(loss3, ref3, atol=1e-4, rtol=1e-4), (loss3, ref3)

    print("KERNEL_OK")
</pallas_src>

<mosaic_0001>
module attributes {stable_mosaic.version = 11 : i64} {
  func.func @_label_smooth_kernel(%arg0: i32, %arg1: memref<8x32xf32, #tpu.memory_space<vmem>>, %arg2: memref<8x1xi32, #tpu.memory_space<vmem>>, %arg3: memref<1x1xf32, #tpu.memory_space<smem>>) attributes {dimension_semantics = [#tpu.dimension_semantics<parallel>], iteration_bounds = array<i64: 1>, scalar_prefetch = 0 : i64, scratch_operands = 0 : i64, tpu.core_type = #tpu.core_type<tc>, window_params = [{transform_indices = @transform_0, window_bounds = array<i64: 8, 32>}, {transform_indices = @transform_1, window_bounds = array<i64: 8, 1>}, {transform_indices = @transform_2, window_bounds = array<i64: 1, 1>}]} {
    %c0 = arith.constant 0 : index
    %c0_0 = arith.constant 0 : index
    %0 = vector.load %arg1[%c0, %c0_0] : memref<8x32xf32, #tpu.memory_space<vmem>>, vector<8x32xf32>
    %cst = arith.constant dense<0xFF800000> : vector<8xf32>
    %1 = vector.multi_reduction <maximumf>, %0, %cst [1] : vector<8x32xf32> to vector<8xf32>
    %2 = vector.shape_cast %1 : vector<8xf32> to vector<8x1xf32>
    %3 = vector.broadcast %2 : vector<8x1xf32> to vector<8x32xf32>
    %4 = arith.subf %0, %3 : vector<8x32xf32>
    %5 = math.exp %4 : vector<8x32xf32>
    %cst_1 = arith.constant dense<0.000000e+00> : vector<8xf32>
    %6 = vector.multi_reduction <add>, %5, %cst_1 [1] : vector<8x32xf32> to vector<8xf32>
    %7 = vector.shape_cast %6 : vector<8xf32> to vector<8x1xf32>
    %8 = math.log %7 : vector<8x1xf32>
    %9 = arith.addf %2, %8 : vector<8x1xf32>
    %10 = tpu.iota {dimensions = array<i32: 1>} : vector<8x32xi32>
    %c0_2 = arith.constant 0 : index
    %c0_3 = arith.constant 0 : index
    %11 = vector.load %arg2[%c0_2, %c0_3] : memref<8x1xi32, #tpu.memory_space<vmem>>, vector<8x1xi32>
    %12 = vector.broadcast %11 : vector<8x1xi32> to vector<8x32xi32>
    %13 = arith.cmpi eq, %10, %12 : vector<8x32xi32>
    %cst_4 = arith.constant 0.899999976 : f32
    %cst_5 = arith.constant 0.0032258064 : f32
    %14 = vector.broadcast %cst_4 : f32 to vector<8x32xf32>
    %15 = vector.broadcast %cst_5 : f32 to vector<8x32xf32>
    %16 = arith.select %13, %14, %15 : vector<8x32xi1>, vector<8x32xf32>
    %17 = arith.mulf %16, %0 : vector<8x32xf32>
    %cst_6 = arith.constant dense<0.000000e+00> : vector<8xf32>
    %18 = vector.multi_reduction <add>, %17, %cst_6 [1] : vector<8x32xf32> to vector<8xf32>
    %19 = vector.shape_cast %18 : vector<8xf32> to vector<8x1xf32>
    %20 = arith.subf %9, %19 : vector<8x1xf32>
    %21 = vector.shape_cast %20 : vector<8x1xf32> to vector<1x8x1xf32>
    %cst_7 = arith.constant dense<0.000000e+00> : vector<1xf32>
    %22 = vector.multi_reduction <add>, %21, %cst_7 [1, 2] : vector<1x8x1xf32> to vector<1xf32>
    %23 = vector.shape_cast %22 : vector<1xf32> to vector<1x1x1xf32>
    %24 = vector.extract %23[0, 0, 0] : f32 from vector<1x1x1xf32>
    %c0_8 = arith.constant 0 : index
    %c0_9 = arith.constant 0 : index
    %25 = memref.load %arg3[%c0_8, %c0_9] : memref<1x1xf32, #tpu.memory_space<smem>>
    memref.store %24, %arg3[%c0_8, %c0_9] : memref<1x1xf32, #tpu.memory_space<smem>>
    return
  }
  func.func @transform_0(%arg0: i32) -> (i32, i32) {
    %c0_i32 = arith.constant 0 : i32
    %c0_i32_0 = arith.constant 0 : i32
    return %arg0, %c0_i32 : i32, i32
  }
  func.func @transform_1(%arg0: i32) -> (i32, i32) {
    %c0_i32 = arith.constant 0 : i32
    %c0_i32_0 = arith.constant 0 : i32
    return %arg0, %c0_i32 : i32, i32
  }
  func.func @transform_2(%arg0: i32) -> (i32, i32) {
    %c0_i32 = arith.constant 0 : i32
    %c0_i32_0 = arith.constant 0 : i32
    return %arg0, %c0_i32 : i32, i32
  }
}

</mosaic_0001>

<bundles_post_ra>
// kernel: tpu_custom_call.1
= control target key start
LH: loop header
LB: loop body
LE: loop exit
PB: predicated region body
PF: predicated region fallthrough
CT: control target
= control target key end

     0   :  { %vm13_vm0 = vcmask 261120   ;;  %s121_s0 = inlined_call_operand.vmem [shape: f32[8,32], index: 0, kind: input, shape index: {}]   ;;  %s122_s1 = inlined_call_operand.vmem [shape: s32[8,1], index: 1, kind: input, shape index: {}]   ;;  %s123_s2 = inlined_call_operand.hbm [shape: f32[1,1], index: 2, kind: output, shape index: {}]  }
   0x1   :  { %v12_v0 = vld [vmem:[%s121_s0] sm:$0xff] }
   0x2   :  { %7 = vsyncpa [#allocation3], 0  ;;  %v14_v1 = vsel %vm13_vm0, %v12_v0, -inf  ;;  %v91_v2 = vmov 0   ;;  %v28_v3 = vld [vmem:[%s122_s1] sm:$0xff]  ;;  %v26_v9 = vlaneseq  ;;  %vm39_vm2 = vcmask 7168  }
   0x3   :  { %72 = vset.pattern.permute.xlu0 %v91_v2  ;;  %v92_v12 = vmov 0.0032258064   ;;  %s57_s13 = sshll.u32 %s123_s2, 4  ;;  %s93_s15 = smov [#allocation2]   ;;  %s58_s13 = int_to_ptr.hbm [resolvable:$true] %s57_s13 }
   0x4   :  { %15 = vmax.xlane.f32.xlu0 %v14_v1  ;;  %v27_v10 = vand.u32 127, %v26_v9 }
  0x18   :  { %30 = vperm.xlu0 %72, %v28_v3  }
  0x77   :  { %v16_v4 = vpop.xlane.xlu0 %15 }
  0x78   :  { %v17_v5 = vsub.f32 %v12_v0, %v16_v4 }
  0x7a   :  { %v18_v6 = vmul.f32 1.442695, %v17_v5 }
  0x7c   :  { %73 = vpow2.f32 %v18_v6 }
  0x82   :  { %v74_v7 = vpop.eup %73 }
  0x83   :  { %v20_v8 = vsel %vm13_vm0, %v74_v7, 0.0 }
  0x84   :  { %21 = vadd.xlane.f32.xlu1 %v20_v8 }
  0x8a   :  { %v31_v11 = vpop.permute.xlu0 %30 }
  0x8b   :  { %vm32_vm1 = vcmp.eq.s32.totalorder %v27_v10, %v31_v11 }
  0x8c   :  { %v33_v13 = vsel %vm32_vm1, 0.9, %v92_v12 }
  0x8d   :  { %v34_v14 = vmul.f32 %v33_v13, %v12_v0 }
  0x8f   :  { %v35_v15 = vsel %vm13_vm0, %v34_v14, 0.0 }
  0x90   :  { %36 = vadd.xlane.f32.xlu1 %v35_v15 }
  0xf7   :  { %v22_v16 = vpop.xlane.xlu1 %21 }
  0xf8   :  { %75 = vlog2.f32 %v22_v16 }
  0xfe   :  { %v76_v17 = vpop.eup %75 }
  0xff   :  { %v24_v18 = vmul.f32 0.6931472, %v76_v17 }
 0x101   :  { %v25_v19 = vadd.f32 %v24_v18, %v16_v4 }
 0x103   :  { %v37_v20 = vpop.xlane.xlu1 %36 }
 0x104   :  { %v38_v21 = vsub.f32 %v25_v19, %v37_v20 }
 0x106   :  { %v40_v22 = vsel %vm39_vm2, %v38_v21, 0.0 }
 0x107   :  { %41 = vadd.xlane.f32.xlu2 %v40_v22 }
 0x17a   :  { %v42_v23 = vpop.xlane.xlu2 %41 }
 0x17b   :  { %v43_v24 = vrot.slane %v42_v23, 4 }
 0x17d   :  { %v44_v25 = vadd.f32 %v43_v24, %v42_v23 }
 0x17f   :  { %v45_v26 = vrot.slane %v44_v25, 2 }
 0x181   :  { %v46_v27 = vadd.f32 %v45_v26, %v44_v25 }
 0x183   :  { %v47_v28 = vrot.slane %v46_v27, 1 }
 0x185   :  { %v48_v29 = vadd.f32 %v47_v28, %v46_v27 }
 0x187   :  { %67 = vpush %v48_v29 }
 0x1b8   :  { %s68_s14 = spop %67 }
 0x1b9   :  { %51 = sst [smem:[#allocation2]] %s68_s14 }
 0x1ba   :  { %60 = dma.smem_to_hbm %s93_s15, 16, %s58_s13, [#allocation3]  }
 0x1bb   :  { %89 = dma.done.wait [#allocation3], 16  }
 0x1bc   :  { %90 = vsyncadd [#allocation3], 4294967280 }
 0x1bd   :  { %65 = sfence }
 0x1be   :  { %66 = vsyncpa [#allocation3], 1 }

</bundles_post_ra>
